<compile_context>
chip_gen: v7x
topology: tpu7x:2x2x1
jax: 0.10.0
libtpu: 0.0.40
codegen_flags: <defaults>
</compile_context>

<pallas_src>
import functools

import jax
import jax.numpy as jnp
from jax.experimental import pallas as pl
from jax.experimental.pallas import tpu as pltpu

_LANE = 128      # f32 lane width
_SUBLANE = 8     # f32 sublane height


def _round_up(n, m):
    return ((n + m - 1) // m) * m


def _qnetwork_kernel(x_ref, p_ref, o_ref, *, d_in_pad, lanes):
    # x: (TB, d_in_pad)   p: packed param slab (rows, lanes)   o: (TB, lanes)
    x = x_ref[...]

    # Static, 8-row-aligned offsets into the parameter slab (zero-cost views).
    w1_off = 0
    b1_off = d_in_pad
    w2_off = d_in_pad + _SUBLANE
    b2_off = d_in_pad + _SUBLANE + lanes

    w1 = p_ref[w1_off:w1_off + d_in_pad, :]   # (d_in_pad, lanes)
    b1 = p_ref[b1_off:b1_off + 1, :]          # (1, lanes)
    w2 = p_ref[w2_off:w2_off + lanes, :]      # (lanes, lanes)
    b2 = p_ref[b2_off:b2_off + 1, :]          # (1, lanes)

    # fc + ReLU (MXU matmul with f32 accumulation, VPU bias-add / max)
    h = jnp.dot(x, w1, preferred_element_type=jnp.float32) + b1
    h = jnp.maximum(h, 0.0)

    # fc2
    out = jnp.dot(h, w2, preferred_element_type=jnp.float32) + b2

    o_ref[...] = out.astype(o_ref.dtype)


def pack_qnetwork_params(w1, b1, w2, b2):
    """Pack fc/fc2 weights + biases into ONE lane-dense f32 slab.

    Row layout (every segment starts on an 8-row boundary, lane width LANES):
      [0               : d_in_pad)             w1  (zero-padded)
      [d_in_pad        : d_in_pad+8)           b1  (row 0, rest zero)
      [d_in_pad+8      : d_in_pad+8+LANES)     w2  (zero-padded)
      [d_in_pad+8+L    : d_in_pad+16+LANES)    b2  (row 0, rest zero)
    """
    d_in, h = w1.shape
    h2, d_out = w2.shape
    assert h == h2, "fc output dim must match fc2 input dim"

    d_in_pad = _round_up(d_in, _SUBLANE)
    lanes = max(_round_up(h, _LANE), _round_up(d_out, _LANE))
    rows = d_in_pad + _SUBLANE + lanes + _SUBLANE

    slab = jnp.zeros((rows, lanes), jnp.float32)
    slab = slab.at[0:d_in, 0:h].set(w1.astype(jnp.float32))
    slab = slab.at[d_in_pad, 0:h].set(b1.astype(jnp.float32))
    slab = slab.at[d_in_pad + _SUBLANE:d_in_pad + _SUBLANE + h,
                   0:d_out].set(w2.astype(jnp.float32))
    slab = slab.at[d_in_pad + _SUBLANE + lanes,
                   0:d_out].set(b2.astype(jnp.float32))
    return slab, d_in_pad, lanes


def qnetwork_forward(x, w1, b1, w2, b2, *, tb=None):
    """relu(x @ w1 + b1) @ w2 + b2 in one batched, pipelined Pallas kernel.

    x : (B, D_in) f32; w1: (D_in, H); b1: (H,); w2: (H, D_out); b2: (D_out,).
    """
    B, d_in = x.shape
    d_out = w2.shape[1]

    slab, d_in_pad, lanes = pack_qnetwork_params(w1, b1, w2, b2)

    # Batch tile: multiple of 8 (f32 sublane); large enough to amortize the
    # per-step pipeline overhead, tiny vs. VMEM budgets everywhere (v7x has
    # only 64 MiB physical / 32 MiB default scoped VMEM per TC).
    if tb is None:
        tb = min(512, _round_up(B, _SUBLANE))
    tb = _round_up(tb, _SUBLANE)
    b_pad = _round_up(B, tb)

    # Zero-pad batch rows (to the tile multiple) and feature columns (to the
    # 8-aligned contraction dim matching the slab).  Zero padding is exact.
    if (b_pad, d_in_pad) != (B, d_in):
        x = jnp.pad(x, ((0, b_pad - B), (0, d_in_pad - d_in)))
    x = x.astype(jnp.float32)

    grid = (b_pad // tb,)
    kernel = functools.partial(_qnetwork_kernel, d_in_pad=d_in_pad, lanes=lanes)

    out_padded = pl.pallas_call(
        kernel,
        out_shape=jax.ShapeDtypeStruct((b_pad, lanes), jnp.float32),
        grid=grid,
        in_specs=[
            # x: tiled along batch, double-buffered across the grid.
            pl.BlockSpec((tb, d_in_pad), lambda i: (i, 0)),
            # Packed params: one DMA, VMEM-resident across every grid step.
            pl.BlockSpec(slab.shape, lambda i: (0, 0)),
        ],
        # Lane-dense output (last dim 128) -> unmasked vector stores.
        out_specs=pl.BlockSpec((tb, lanes), lambda i: (i, 0)),
        compiler_params=pltpu.CompilerParams(
            dimension_semantics=("parallel",)),  # shard batch grid over TCs
    )(x, slab)

    return out_padded[:B, :d_out]


def init_qnetwork_params(key, input_size, output_size, hidden=10):
    """Deterministic init mimicking PyTorch nn.Linear default
    (uniform +-1/sqrt(fan_in)); weights already transposed to
    (in_features, out_features)."""
    k1, k2, k3, k4 = jax.random.split(key, 4)
    bound1 = 1.0 / (input_size ** 0.5)
    bound2 = 1.0 / (hidden ** 0.5)
    w1 = jax.random.uniform(k1, (input_size, hidden), jnp.float32, -bound1, bound1)
    b1 = jax.random.uniform(k2, (hidden,), jnp.float32, -bound1, bound1)
    w2 = jax.random.uniform(k3, (hidden, output_size), jnp.float32, -bound2, bound2)
    b2 = jax.random.uniform(k4, (output_size,), jnp.float32, -bound2, bound2)
    return w1, b1, w2, b2


if __name__ == "__main__":
    key = jax.random.PRNGKey(0)
    kx, kp = jax.random.split(key)

    batch = 256          # amortize launch overhead; exercises the batch grid
    input_size = 16
    output_size = 4

    x = jax.random.normal(kx, (batch, input_size), jnp.float32)
    w1, b1, w2, b2 = init_qnetwork_params(kp, input_size, output_size)

    out = qnetwork_forward(x, w1, b1, w2, b2, tb=64)   # grid = (4,)
    out = jax.block_until_ready(out)

    # Pure-JAX reference (same semantics as the PyTorch module).
    ref = jnp.maximum(x @ w1 + b1, 0.0) @ w2 + b2
    assert out.shape == (batch, output_size)
    assert jnp.allclose(out, ref, atol=1e-5, rtol=1e-5)

    print("KERNEL_OK")
</pallas_src>

<mosaic_0001>
module attributes {stable_mosaic.version = 11 : i64} {
  func.func @_qnetwork_kernel(%arg0: i32, %arg1: memref<64x16xf32, #tpu.memory_space<vmem>>, %arg2: memref<160x128xf32, #tpu.memory_space<vmem>>, %arg3: memref<64x128xf32, #tpu.memory_space<vmem>>) attributes {dimension_semantics = [#tpu.dimension_semantics<parallel>], iteration_bounds = array<i64: 4>, scalar_prefetch = 0 : i64, scratch_operands = 0 : i64, tpu.core_type = #tpu.core_type<tc>, window_params = [{transform_indices = @transform_0, window_bounds = array<i64: 64, 16>}, {pipeline_mode = #tpu.pipeline_mode<synchronous>, transform_indices = @transform_1, window_bounds = array<i64: 160, 128>}, {transform_indices = @transform_2, window_bounds = array<i64: 64, 128>}]} {
    %c0 = arith.constant 0 : index
    %c0_0 = arith.constant 0 : index
    %0 = vector.load %arg1[%c0, %c0_0] : memref<64x16xf32, #tpu.memory_space<vmem>>, vector<64x16xf32>
    %c0_1 = arith.constant 0 : index
    %c0_2 = arith.constant 0 : index
    %1 = vector.load %arg2[%c0_1, %c0_2] : memref<160x128xf32, #tpu.memory_space<vmem>>, vector<16x128xf32>
    %c16 = arith.constant 16 : index
    %c0_3 = arith.constant 0 : index
    %2 = vector.load %arg2[%c16, %c0_3] : memref<160x128xf32, #tpu.memory_space<vmem>>, vector<1x128xf32>
    %c24 = arith.constant 24 : index
    %c0_4 = arith.constant 0 : index
    %3 = vector.load %arg2[%c24, %c0_4] : memref<160x128xf32, #tpu.memory_space<vmem>>, vector<128x128xf32>
    %c152 = arith.constant 152 : index
    %c0_5 = arith.constant 0 : index
    %4 = vector.load %arg2[%c152, %c0_5] : memref<160x128xf32, #tpu.memory_space<vmem>>, vector<1x128xf32>
    %cst = arith.constant dense<0.000000e+00> : vector<64x128xf32>
    %5 = tpu.matmul %0, %1, %cst {dimension_numbers = #tpu.dot_dimension_numbers<[1], [0], [0], [1], [0, 0, 1, 1], [], []>} : vector<64x16xf32>, vector<16x128xf32>, vector<64x128xf32> -> vector<64x128xf32>
    %6 = vector.broadcast %2 : vector<1x128xf32> to vector<64x128xf32>
    %7 = arith.addf %5, %6 : vector<64x128xf32>
    %cst_6 = arith.constant 0.000000e+00 : f32
    %8 = vector.broadcast %cst_6 : f32 to vector<64x128xf32>
    %9 = arith.maximumf %7, %8 : vector<64x128xf32>
    %cst_7 = arith.constant dense<0.000000e+00> : vector<64x128xf32>
    %10 = tpu.matmul %9, %3, %cst_7 {dimension_numbers = #tpu.dot_dimension_numbers<[1], [0], [0], [1], [0, 0, 1, 1], [], []>} : vector<64x128xf32>, vector<128x128xf32>, vector<64x128xf32> -> vector<64x128xf32>
    %11 = vector.broadcast %4 : vector<1x128xf32> to vector<64x128xf32>
    %12 = arith.addf %10, %11 : vector<64x128xf32>
    %c0_8 = arith.constant 0 : index
    %c0_9 = arith.constant 0 : index
    %13 = vector.load %arg3[%c0_8, %c0_9] : memref<64x128xf32, #tpu.memory_space<vmem>>, vector<64x128xf32>
    tpu.vector_store %arg3[%c0_8, %c0_9], %12 {strides = array<i32>} : memref<64x128xf32, #tpu.memory_space<vmem>>, vector<64x128xf32>,
    return
  }
  func.func @transform_0(%arg0: i32) -> (i32, i32) {
    %c0_i32 = arith.constant 0 : i32
    %c0_i32_0 = arith.constant 0 : i32
    return %arg0, %c0_i32 : i32, i32
  }
  func.func @transform_1(%arg0: i32) -> (i32, i32) {
    %c0_i32 = arith.constant 0 : i32
    %c0_i32_0 = arith.constant 0 : i32
    %c0_i32_1 = arith.constant 0 : i32
    return %c0_i32, %c0_i32_0 : i32, i32
  }
  func.func @transform_2(%arg0: i32) -> (i32, i32) {
    %c0_i32 = arith.constant 0 : i32
    %c0_i32_0 = arith.constant 0 : i32
    return %arg0, %c0_i32 : i32, i32
  }
}

</mosaic_0001>

<bundles_post_ra>
// kernel: tpu_custom_call.1
= control target key start
LH: loop header
LB: loop body
LE: loop exit
PB: predicated region body
PF: predicated region fallthrough
CT: control target
= control target key end

     0   :  { %7 = vsyncpa [#allocation3], 0  ;;  %s984_s0 = inlined_call_operand.vmem [shape: f32[256,16], index: 0, kind: input, shape index: {}]   ;;  %s985_s1 = inlined_call_operand.vmem [shape: f32[160,128], index: 1, kind: input, shape index: {}]   ;;  %s986_s2 = inlined_call_operand.hbm [shape: f32[256,128], index: 2, kind: output, shape index: {}]  }
   0x1   :  { %9 = vsyncpa [#allocation3 + $0x1], 0  ;;  %s800_s9 = smov 0   ;;  %s802_s10 = smov 0  }
   0x2   :  { %s804_s11 = smov 0   ;;  %s806_s12 = smov 0  }
   0x3 LB: > { %s821_s13 = sadd.s32 4294967295, %s780_s12   ;;  %s508_s14 = sadd.s32 4294967294, %s780_s12   ;;  %s780_s12 = sphi %s806_s12, %s992_s12   ;;  %s776_s11 = sphi %s804_s11, %s991_s11   ;;  %s772_s10 = sphi %s802_s10, %s990_s10   ;;  %s768_s9 = sphi %s800_s9, %s989_s9  }
   0x4   : > { %s825_s15 = sadd.s32 1, %s780_s12   ;;  %s69_s16 = sadd.s32 1, %s776_s11 }
   0x5   : > { %s66_s17 = ssub.s32 %s780_s12, %s825_s15  ;;  %p79_p0 = scmp.ne.s32.totalorder %s776_s11, %s772_s10 }
   0x6   : > { %p67_p1 = scmp.eq.s32.totalorder %s66_s17, 0  ;;  %p80_p2 = scmp.eq.s32.totalorder %s821_s13, 3 }
   0x7   : > { %p85_p3 = scmp.ne.s32.totalorder %s772_s10, %s768_s9  ;;  %p86_p4 = scmp.eq.s32.totalorder %s508_s14, 3 }
   0x8   : > { %s836_s18 = scalar_select %p67_p1, %s776_s11, %s69_s16  }
   0x9   : > { %p838_p5 = por %p80_p2, %p79_p0  ;;  %p842_p6 = por %p86_p4, %p85_p3 }
   0xa   : > { %p511_p7 = scmp.ge.s32.totalorder %s780_s12, 1  ;;  %p116_p8 = scmp.lt.s32.totalorder %s780_s12, 5 }
   0xc   : > { %p117_p9 = pnand %p511_p7, %p116_p8 }
   0xd   : > { %v153_v0 = vld [vmem:[%s985_s1] sm:$0xff] (!%p117_p9)  ;;  %v154_v1 = vld [vmem:[%s985_s1 + $0x8] sm:$0xff] (!%p117_p9)  ;;  %s513_s25 = sshll.u32 (!%p117_p9), %s821_s13, 3  ;;  %v156_v2 = vld [vmem:[%s985_s1 + $0x18] sm:$0xff] (!%p117_p9)  ;;  %vm177_vm0 = vcmask (!%p117_p9), 130048   ;;  %s135_s26 = sand.u32 (!%p117_p9), 1, %s772_s10  }
   0xe   : > { %120 = sbr.rel (%p117_p9) target bundleno = 486 (0x1e6), region = 28  ;;  %v625_v3 = vpack.c.bf16 (!%p117_p9), %v154_v1, %v153_v0  ;;  %p139_p10 = scmp.lt.s32.totalorder (!%p117_p9), %s513_s25, 31  ;;  %v157_v4 = vld [vmem:[%s985_s1 + $0x20] sm:$0xff] (!%p117_p9)  ;;  %v158_v5 = vld [vmem:[%s985_s1 + $0x28] sm:$0xff] (!%p117_p9)  ;;  %v159_v6 = vld [vmem:[%s985_s1 + $0x30] sm:$0xff] (!%p117_p9) }
   0xf   : > { %v629_v7 = vpack.c.bf16 (!%p117_p9), %v157_v4, %v156_v2  ;;  %v633_v8 = vpack.c.bf16 (!%p117_p9), %v159_v6, %v158_v5  ;;  %v160_v9 = vld [vmem:[%s985_s1 + $0x38] sm:$0xff] (!%p117_p9)  ;;  %v161_v10 = vld [vmem:[%s985_s1 + $0x40] sm:$0xff] (!%p117_p9)  ;;  %v162_v16 = vld [vmem:[%s985_s1 + $0x48] sm:$0xff] (!%p117_p9)  ;;  %s512_s27 = sshll.u32 (!%p117_p9), %s135_s26, 6  ;;  %s530_s3 = sshll.u32 (!%p117_p9), %s821_s13, 10 }
  0x10   : > { %626 = vmatprep.subr.bf16.mxu0 (!%p117_p9), %v625_v3  ;;  %v637_v14 = vpack.c.bf16 (!%p117_p9), %v161_v10, %v160_v9  ;;  %v163_v17 = vld [vmem:[%s985_s1 + $0x50] sm:$0xff] (!%p117_p9)  ;;  %v164_v21 = vld [vmem:[%s985_s1 + $0x58] sm:$0xff] (!%p117_p9)  ;;  %v165_v22 = vld [vmem:[%s985_s1 + $0x60] sm:$0xff] (!%p117_p9)  ;;  %s137_s30 = scalar_lea.vmem (!%p117_p9), [#allocation2], %s512_s27  ;;  %s937_s7 = scalar_lea.hbm (!%p117_p9), %s986_s2, %s530_s3 }
  0x11   : > { %628 = vmatpush3.bf16.msra.mxu0 (!%p117_p9), %v625_v3  ;;  %661 = vmatprep.subr.bf16.mxu1 (!%p117_p9), %v629_v7  ;;  %v641_v19 = vpack.c.bf16 (!%p117_p9), %v163_v17, %v162_v16  ;;  %v645_v24 = vpack.c.bf16 (!%p117_p9), %v165_v22, %v164_v21  ;;  %v166_v25 = vld [vmem:[%s985_s1 + $0x68] sm:$0xff] (!%p117_p9)  ;;  %v167_v26 = vld [vmem:[%s985_s1 + $0x70] sm:$0xff] (!%p117_p9)  ;;  %v168_v29 = vld [vmem:[%s985_s1 + $0x78] sm:$0xff] (!%p117_p9)  ;;  %s446_s4 = sshll.u32 (!%p117_p9), %s137_s30, 4  ;;  %s943_s13 = scalar_lea.sflag (!%p117_p9), [#allocation3], %s135_s26  ;;  %s939_s4 = int_to_ptr.vmem [resolvable:$true] %s446_s4 }
  0x12   : > { %630 = vmatprep.subr.bf16.mxu0 (!%p117_p9), %v629_v7  ;;  %669 = vmatpush3.bf16.msra.mxu1 (!%p117_p9), %v629_v7  ;;  %v649_v28 = vpack.c.bf16 (!%p117_p9), %v167_v26, %v166_v25  ;;  %v169_v30 = vld [vmem:[%s985_s1 + $0x80] sm:$0xff] (!%p117_p9)  ;;  %v170_v32 = vld [vmem:[%s985_s1 + $0x88] sm:$0xff] (!%p117_p9)  ;;  %v171_v33 = vld [vmem:[%s985_s1 + $0x90] sm:$0xff] (!%p117_p9)  ;;  %s718_s8 = scalar_lea.vmem (!%p117_p9), %s939_s4, 1024  ;;  %s782_s16 = smov (!%p117_p9), [#allocation2]  }
  0x13   : > { %662 = vmatprep.subr.bf16.mxu1 (!%p117_p9), %v633_v8  ;;  %v653_v31 = vpack.c.bf16 (!%p117_p9), %v169_v30, %v168_v29  ;;  %v657_v34 = vpack.c.bf16 (!%p117_p9), %v171_v33, %v170_v32  ;;  %v515_v35 = vld [vmem:[%s985_s1 + $0x10] ss:$0 sm:$0xff] (!%p117_p9)  ;;  %v524_v60 = vld [vmem:[%s985_s1 + $0x98] ss:$0 sm:$0xff] (!%p117_p9)  ;;  %p719_p11 = scmp.ne.s32.totalorder (!%p117_p9), %s939_s4, %s718_s8  ;;  %s722_s17 = sshll.u32 (!%p117_p9), %s782_s16, 4  ;;  %s723_s17 = int_to_ptr.vmem [resolvable:$false] %s722_s17 }
  0x14   : > { %p725_p0 = scmp.lt.s32.totalorder (!%p117_p9), %s939_s4, %s723_s17 }
  0x15   : > { %s994_s25 = smov (!%p139_p10, %s513_s25), 31  ;;  %p720_p12 = pnand %p719_p11, %p838_p5 }
  0x16   : > { %s514_s6 = sshll.u32 %s994_s25, 3  ;;  %670 = vmatpush3.bf16.msra.mxu1 %v633_v8 }
  0x17   : > { %s870_s14 = scalar_lea.vmem %s984_s0, %s514_s6  ;;  %663 = vmatprep.subr.bf16.mxu1 %v637_v14  ;;  %p721_p13 = pneg %p720_p12 }
  0x18   : > { %v145_v11 = vld [vmem:[%s870_s14] sm:$0xff]  ;;  %v146_v12 = vld [vmem:[%s870_s14 + $0x8] sm:$0xff]  ;;  %v147_v13 = vld [vmem:[%s870_s14 + $0x10] sm:$0xff] }
  0x19   : > { %569 = vmatprep.mubr.msk.f32.mxu0 %vm177_vm0, %v145_v11  ;;  %v148_v15 = vld [vmem:[%s870_s14 + $0x18] sm:$0xff]  ;;  %v149_v18 = vld [vmem:[%s870_s14 + $0x20] sm:$0xff]  ;;  %v150_v20 = vld [vmem:[%s870_s14 + $0x28] sm:$0xff] }
  0x1a   : > { %570 = vmatmul.mubr.msk.f32.vlgmr.msra.gmra.mrb[0].mxu0 %vm177_vm0, %v146_v12  ;;  %671 = vmatpush3.bf16.msra.mxu1 %v637_v14  ;;  %v151_v23 = vld [vmem:[%s870_s14 + $0x30] sm:$0xff]  ;;  %v152_v27 = vld [vmem:[%s870_s14 + $0x38] sm:$0xff]  ;;  %s724_s14 = scalar_lea.vmem %s723_s17, 2048 }
  0x1b   : > { %572 = vmatprep.mubr.msk.f32.mxu0 %vm177_vm0, %v147_v13  ;;  %632 = vmatpush3.bf16.msra.mxu0 %v629_v7  ;;  %p726_p1 = scmp.lt.s32.totalorder %s724_s14, %s718_s8 }
  0x1c   : > { %634 = vmatprep.subr.bf16.mxu0 %v633_v8  ;;  %664 = vmatprep.subr.bf16.mxu1 %v641_v19 }
  0x1d   : > { %p727_p2 = por %p726_p1, %p725_p0 }
  0x1e   : > { %573 = vmatmul.mubr.msk.f32.gmra.mrb[2].mxu0 %vm177_vm0, %v148_v15  ;;  %672 = vmatpush3.bf16.msra.mxu1 %v641_v19 }
  0x1f   : > { %575 = vmatprep.mubr.msk.f32.mxu0 %vm177_vm0, %v149_v18  ;;  %636 = vmatpush3.bf16.msra.mxu0 %v633_v8  ;;  %p728_p3 = pnand %p727_p2, %p721_p13 }
  0x20   : > { %638 = vmatprep.subr.bf16.mxu0 %v637_v14  ;;  %665 = vmatprep.subr.bf16.mxu1 %v645_v24 }
  0x22   : > { %576 = vmatmul.mubr.msk.f32.gmra.mrb[4].mxu0 %vm177_vm0, %v150_v20  ;;  %673 = vmatpush3.bf16.msra.mxu1 %v645_v24 }
  0x23   : > { %578 = vmatprep.mubr.msk.f32.mxu0 %vm177_vm0, %v151_v23  ;;  %640 = vmatpush3.bf16.msra.mxu0 %v637_v14 }
  0x24   : > { %642 = vmatprep.subr.bf16.mxu0 %v641_v19  ;;  %666 = vmatprep.subr.bf16.mxu1 %v649_v28 }
  0x26   : > { %579 = vmatmul.mubr.msk.f32.gmra.mrb[6].mxu0 %vm177_vm0, %v152_v27  ;;  %674 = vmatpush3.bf16.msra.mxu1 %v649_v28 }
  0x27   : > { %644 = vmatpush3.bf16.msra.mxu0 %v641_v19  ;;  %667 = vmatprep.subr.bf16.mxu1 %v653_v31 }
  0x28   : > { %646 = vmatprep.subr.bf16.mxu0 %v645_v24 }
  0x2a   : > { %675 = vmatpush3.bf16.msra.mxu1 %v653_v31 }
  0x2b   : > { %648 = vmatpush3.bf16.msra.mxu0 %v645_v24  ;;  %668 = vmatprep.subr.bf16.mxu1 %v657_v34 }
  0x2c   : > { %650 = vmatprep.subr.bf16.mxu0 %v649_v28 }
  0x2e   : > { %676 = vmatpush3.bf16.msra.mxu1 %v657_v34 }
  0x2f   : > { %652 = vmatpush3.bf16.msra.mxu0 %v649_v28 }
  0x30   : > { %654 = vmatprep.subr.bf16.mxu0 %v653_v31 }
  0x33   : > { %656 = vmatpush3.bf16.msra.mxu0 %v653_v31 }
  0x34   : > { %658 = vmatprep.subr.bf16.mxu0 %v657_v34 }
  0x37   : > { %660 = vmatpush3.bf16.msra.mxu0 %v657_v34 }
  0xed   : > { %v571_v36 = vpop.f32.mrb[0].mxu0 }
  0xee   : > { %v274_v37 = vadd.f32 %v571_v36, %v515_v35  ;;  %v268_v38 = vpop.f32.mrb[1].mxu0 }
  0xef   : > { %v269_v39 = vadd.f32 %v515_v35, %v268_v38 }
  0xf0   : > { %v308_v42 = vmax.f32 %v274_v37, 0.0 }
  0xf1   : > { %v307_v40 = vmax.f32 %v269_v39, 0.0  ;;  %v574_v41 = vpop.f32.mrb[2].mxu0 }
  0xf2   : > { %v284_v43 = vadd.f32 %v574_v41, %v515_v35  ;;  %v278_v44 = vpop.f32.mrb[3].mxu0 }
  0xf3   : > { %613 = vmatprep.mubr.f32.mxu0 %v307_v40  ;;  %v279_v45 = vadd.f32 %v515_v35, %v278_v44 }
  0xf4   : > { %614 = vmatmul.mubr.f32.vlgmr.msra.gmra.mrb[8].mxu0 %v308_v42  ;;  %v310_v48 = vmax.f32 %v284_v43, 0.0 }
  0xf5   : > { %v577_v46 = vpop.f32.mrb[4].mxu0  ;;  %v309_v47 = vmax.f32 %v279_v45, 0.0 }
  0xf6   : > { %v294_v49 = vadd.f32 %v577_v46, %v515_v35  ;;  %v288_v50 = vpop.f32.mrb[5].mxu0 }
  0xf7   : > { %v289_v51 = vadd.f32 %v515_v35, %v288_v50  ;;  %616 = vmatprep.mubr.f32.mxu1 %v309_v47 }
  0xf8   : > { %617 = vmatmul.mubr.f32.vlgmr.msra.gmra.mrb[0].mxu1 %v310_v48  ;;  %v312_v54 = vmax.f32 %v294_v49, 0.0 }
  0xf9   : > { %v311_v52 = vmax.f32 %v289_v51, 0.0  ;;  %v580_v53 = vpop.f32.mrb[6].mxu0 }
  0xfa   : > { %v304_v55 = vadd.f32 %v580_v53, %v515_v35  ;;  %v298_v56 = vpop.f32.mrb[7].mxu0 }
  0xfb   : > { %v299_v57 = vadd.f32 %v515_v35, %v298_v56  ;;  %619 = vmatprep.mubr.f32.mxu1 %v311_v52 }
  0xfc   : > { %620 = vmatmul.mubr.f32.gmra.mrb[2].mxu1 %v312_v54  ;;  %v314_v59 = vmax.f32 %v304_v55, 0.0 }
  0xfd   : > { %v313_v58 = vmax.f32 %v299_v57, 0.0 }
  0xff   : > { %622 = vmatprep.mubr.f32.mxu1 %v313_v58 }
 0x100   : > { %623 = vmatmul.mubr.f32.gmra.mrb[4].mxu1 %v314_v59 }
 0x1c7   : > { %v615_v61 = vpop.f32.mrb[8].mxu0 }
 0x1c8   : > { %v391_v62 = vadd.f32 %v615_v61, %v524_v60  ;;  %v385_v63 = vpop.f32.mrb[9].mxu0 }
 0x1c9   : > { %v386_v0 = vadd.f32 %v524_v60, %v385_v63 }
 0x1ca   : > { %425 = vst [vmem:[%s137_s30 + $0x8] sm:$0xff] %v391_v62 }
 0x1cb   : > { %424 = vst [vmem:[%s137_s30] sm:$0xff] %v386_v0  ;;  %v618_v1 = vpop.f32.mrb[0].mxu1 }
 0x1cc   : > { %v401_v2 = vadd.f32 %v618_v1, %v524_v60  ;;  %v395_v3 = vpop.f32.mrb[1].mxu1 }
 0x1cd   : > { %v396_v4 = vadd.f32 %v524_v60, %v395_v3 }
 0x1ce   : > { %427 = vst [vmem:[%s137_s30 + $0x18] sm:$0xff] %v401_v2 }
 0x1cf   : > { %426 = vst [vmem:[%s137_s30 + $0x10] sm:$0xff] %v396_v4  ;;  %v621_v5 = vpop.f32.mrb[2].mxu1 }
 0x1d0   : > { %v411_v6 = vadd.f32 %v621_v5, %v524_v60  ;;  %v405_v7 = vpop.f32.mrb[3].mxu1 }
 0x1d1   : > { %v406_v8 = vadd.f32 %v524_v60, %v405_v7 }
 0x1d2   : > { %429 = vst [vmem:[%s137_s30 + $0x28] sm:$0xff] %v411_v6 }
 0x1d3   : > { %428 = vst [vmem:[%s137_s30 + $0x20] sm:$0xff] %v406_v8  ;;  %v624_v9 = vpop.f32.mrb[4].mxu1 }
 0x1d4   : > { %v421_v10 = vadd.f32 %v624_v9, %v524_v60  ;;  %v415_v11 = vpop.f32.mrb[5].mxu1 }
 0x1d5   : > { %v416_v12 = vadd.f32 %v524_v60, %v415_v11 }
 0x1d6   : > { %431 = vst [vmem:[%s137_s30 + $0x38] sm:$0xff] %v421_v10 }
 0x1d7   : > { %430 = vst [vmem:[%s137_s30 + $0x30] sm:$0xff] %v416_v12 }
 0x1d8   : > { %731 = shalt.err (!%p728_p3)
}
 0x1d9   : > { %s732_s21 = scalar_lea.hbm %s937_s7, 1024  ;;  %s736_s24 = scalar_lea.hbm %s986_s2, 4096 }
 0x1da   : > { %p733_p4 = scmp.ne.s32.totalorder %s937_s7, %s732_s21  ;;  %p737_p9 = scmp.lt.u32.totalorder %s937_s7, %s986_s2 }
 0x1db   : > { %p738_p10 = scmp.lt.u32.totalorder %s736_s24, %s732_s21  ;;  %p740_p12 = scmp.lt.u32.totalorder %s732_s21, %s937_s7 }
 0x1dc   : > { %p734_p7 = pnand %p733_p4, %p838_p5 }
 0x1dd   : > { %p739_p11 = por %p738_p10, %p737_p9 }
 0x1de   : > { %p735_p8 = pneg %p734_p7 }
 0x1df   : > { %p741_p13 = por %p740_p12, %p739_p11 }
 0x1e1   : > { %p742_p0 = pnand %p741_p13, %p735_p8 }
 0x1e3   : > { %745 = shalt.err (!%p742_p0)
}
 0x1e4   : > { %s783_s27 = smov 128   ;;  %s784_s28 = smov 8  }
 0x1e5   : > { %677 = dma.vmem_to_hbm [thread:$0]  (%p838_p5), %s939_s4, 1024, %s937_s7, %s943_s13, %s783_s27, %s783_s27, %s784_s28  }
 0x1e6 PF: > { %p683_p1 = scmp.ge.s32.totalorder %s780_s12, 2  ;;  %s461_s29 = sand.u32 1, %s768_s9  }
 0x1e7   : > { %s462_s30 = scalar_lea.sflag [#allocation3], %s461_s29 }
 0x1e8   : > { %p680_p2 = pnand %p683_p1, %p842_p6 }
 0x1ea   : > { %763 = dma.done.wait (!%p680_p2), %s462_s30, 1024  }
 0x1eb   : > { %765 = vsyncadd (!%p680_p2), %s462_s30, 4294966272  ;;  %p12_p3 = scmp.ge.s32.totalorder %s825_s15, 6   ;;  %s989_s9 = smov %s772_s10 }
 0x1ec   : > { %s990_s10 = smov %s776_s11  ;;  %s991_s11 = smov %s836_s18 }
 0x1ed   : > { %s992_s12 = smov %s825_s15  ;;  %14 = sbr.rel (!%p12_p3) target bundleno = 3 (0x3), region = 63 }
 0x1f4   :  { %467 = vsyncpa [#allocation3], 1 }
 0x1f5   :  { %469 = vsyncpa [#allocation3 + $0x1], 1 }

</bundles_post_ra>
